<compile_context>
chip_gen: v6e
topology: v6e:2x2x1
jax: 0.10.0
libtpu: 0.0.40
codegen_flags: <defaults>
</compile_context>

<pallas_src>
import functools

import jax
import jax.numpy as jnp
from jax.experimental import pallas as pl
from jax.experimental.pallas import tpu as pltpu

LN_EPS = 1e-5
NEG_BIG = -1e30          # finite "-inf": masked lanes never create inf/NaN math

APPLY_LAST_ZERO_INIT = False


def _round_up(x, m):
    return (x + m - 1) // m * m


def _pick_hw_tile(hw, c, target_bytes):
    """Lane tile along the flattened spatial dim.

    Targets ~target_bytes per x block (big blocks amortize the ~0.35us
    per-grid-step overhead), prefers tiles that divide HW exactly (no ragged
    tail -> no in-kernel masking), and returns either a multiple of 128 or the
    full HW when HW < 128."""
    if hw < 128:
        return hw                                    # single sub-128 full-dim tile
    max_lanes = max(128, (target_bytes // (c * 4)) // 128 * 128)
    if hw % 128 == 0 and hw <= max_lanes:
        return hw                                    # whole HW in one block
    if hw <= max_lanes:
        max_lanes = (hw // 128) * 128                # largest 128-multiple <= hw
    best_div = 0
    for cand in range(max_lanes, 0, -128):           # prefer exact divisors of HW
        if hw % cand == 0:
            best_div = cand
            break
    if best_div >= max_lanes // 2:
        return best_div                              # divisor: no ragged tile
    return max_lanes                                 # ragged tail, masked in-kernel


def _vmem_limit(need_bytes):
    """Explicit scoped-VMEM budget: need + headroom, floored at the 32 MiB
    default and capped well under v7x's 64 MiB per-core VMEM."""
    return int(min(48 << 20, max(need_bytes + (4 << 20), 32 << 20)))


# ---------------------------------------------------------------------------
# Kernel 1: streaming spatial pool (online softmax) -> per-(b, g) partials
# ---------------------------------------------------------------------------
def _pool_kernel(x_ref, wm_ref, bm_ref, c_out, l_out, m_out,
                 m_acc, l_acc, c_acc, *, hw, t_hw, tiles_per_group, ragged):
    g = pl.program_id(1)
    t = pl.program_id(2)

    @pl.when(t == 0)
    def _init():
        m_acc[...] = jnp.full_like(m_acc, NEG_BIG)
        l_acc[...] = jnp.zeros_like(l_acc)
        c_acc[...] = jnp.zeros_like(c_acc)

    def _step(masked):
        # conv_mask logits: broadcast-multiply (VPU) + sublane reduce (XLU)
        # over channels -- no degenerate M=1 MXU matmul.
        logits = (jnp.sum(x_ref[0] * wm_ref[...], axis=0, keepdims=True)
                  + bm_ref[...])                                     # (1, T)
        if masked:  # ragged last tile only (statically gated)
            lane = jax.lax.broadcasted_iota(jnp.int32, (1, t_hw), 1)
            start = (g * tiles_per_group + t) * t_hw
            valid = start + lane < hw
            logits = jnp.where(valid, logits, NEG_BIG)

        m_old = m_acc[...]                                           # (1, 1)
        m_new = jnp.maximum(m_old, jnp.max(logits, axis=1, keepdims=True))
        alpha = jnp.exp(m_old - m_new)
        p = jnp.exp(logits - m_new)                                  # (1, T)
        l_acc[...] = alpha * l_acc[...] + jnp.sum(p, axis=1, keepdims=True)
        # Re-read x from VMEM here instead of reusing the value loaded for the
        # logits: keeps the tile-wide vreg live range short at large tiles.
        contrib = x_ref[0] * p                                       # (C, T)
        if masked:
            contrib = jnp.where(valid, contrib, 0.0)   # garbage * 0 could be NaN
        c_acc[...] = alpha * c_acc[...] + jnp.sum(contrib, axis=1, keepdims=True)
        m_acc[...] = m_new

    if ragged:
        last = jnp.logical_and(g == pl.num_programs(1) - 1,
                               t == tiles_per_group - 1)

        @pl.when(jnp.logical_not(last))
        def _():
            _step(masked=False)

        @pl.when(last)
        def _():
            _step(masked=True)
    else:
        _step(masked=False)

    @pl.when(t == tiles_per_group - 1)
    def _finalize():
        c_out[0, 0] = c_acc[...]
        l_out[0, 0] = l_acc[...]
        m_out[0, 0] = m_acc[...]


# ---------------------------------------------------------------------------
# Kernel 2: out = x + channel_add_term (broadcast over HW), unpadded layout
# ---------------------------------------------------------------------------
def _fusion_kernel(x_ref, add_ref, o_ref):
    o_ref[0] = (x_ref[0] + add_ref[0]).astype(o_ref.dtype)


@functools.partial(jax.jit, static_argnames=("target_bytes",))
def context_block_forward(x, params, *, target_bytes=4 << 20):
    """x: NCHW float32.  params: dict of weights in PyTorch-natural 2-D layouts."""
    B, C, H, W = x.shape
    HW = H * W
    x2d = x.reshape(B, C, HW)                       # free view, no copy

    t_hw = _pick_hw_tile(HW, C, target_bytes)
    n_t = pl.cdiv(HW, t_hw)
    ragged = (HW % t_hw) != 0

    # Split the HW reduction into 2 accumulator groups (merged below in XLA)
    # when the batch axis alone cannot keep both v7x TensorCores busy.
    # TODO(synk): odd tile counts with odd B are left unsplit.
    n_groups = 2 if (B % 2 == 1 and n_t % 2 == 0) else 1
    tpg = n_t // n_groups

    # Channel padding only when C is not sublane-aligned, and only for the
    # pooling kernel.  Aligned channels -> zero copies of x anywhere.
    Cp = _round_up(C, 8)
    if Cp == C:
        x_pool = x2d
        wm_col = params["wm"].T                                       # (C, 1)
    else:
        x_pool = jnp.pad(x2d, ((0, 0), (0, Cp - C), (0, 0)))
        wm_col = jnp.pad(params["wm"].T, ((0, Cp - C), (0, 0)))

    f32 = 4
    x_blk = Cp * _round_up(t_hw, 128) * f32
    small = (4 * Cp + 64) * 128 * f32               # tiny weights / outs / scratch

    # ---- kernel 1: per-(batch, group) online-softmax partials --------------
    c_part, l_part, m_part = pl.pallas_call(
        functools.partial(_pool_kernel, hw=HW, t_hw=t_hw,
                          tiles_per_group=tpg, ragged=ragged),
        out_shape=(jax.ShapeDtypeStruct((B, n_groups, Cp, 1), jnp.float32),
                   jax.ShapeDtypeStruct((B, n_groups, 1, 1), jnp.float32),
                   jax.ShapeDtypeStruct((B, n_groups, 1, 1), jnp.float32)),
        grid_spec=pltpu.PrefetchScalarGridSpec(
            num_scalar_prefetch=0,
            grid=(B, n_groups, tpg),
            in_specs=[
                pl.BlockSpec((1, Cp, t_hw), lambda b, g, t: (b, 0, g * tpg + t)),
                pl.BlockSpec((Cp, 1), lambda b, g, t: (0, 0)),   # conv_mask w
                pl.BlockSpec((1, 1), lambda b, g, t: (0, 0)),    # conv_mask b
            ],
            out_specs=[
                pl.BlockSpec((1, 1, Cp, 1), lambda b, g, t: (b, g, 0, 0)),
                pl.BlockSpec((1, 1, 1, 1), lambda b, g, t: (b, g, 0, 0)),
                pl.BlockSpec((1, 1, 1, 1), lambda b, g, t: (b, g, 0, 0)),
            ],
            scratch_shapes=[pltpu.VMEM((1, 1), jnp.float32),     # running max
                            pltpu.VMEM((1, 1), jnp.float32),     # running sum
                            pltpu.VMEM((Cp, 1), jnp.float32)],   # context acc
        ),
        compiler_params=pltpu.CompilerParams(
            dimension_semantics=("parallel", "parallel", "arbitrary"),
            vmem_limit_bytes=_vmem_limit(2 * x_blk + small)),
    )(x_pool, wm_col, params["bm"])

    # ---- merge group partials + channel_add MLP (tiny per-batch math, XLA) -
    m_max = jnp.max(m_part, axis=1, keepdims=True)                  # (B,1,1,1)
    g_w = jnp.exp(m_part - m_max)                                   # (B,G,1,1)
    l_tot = jnp.sum(l_part * g_w, axis=1)                           # (B,1,1)
    c_tot = jnp.sum(c_part * g_w, axis=1)                           # (B,Cp,1)
    context = c_tot[:, :C, 0] / l_tot[:, :, 0]                      # (B,C)

    y = context @ params["w1"].T + params["b1"][:, 0]               # (B,P)
    mu = jnp.mean(y, axis=1, keepdims=True)
    var = jnp.mean((y - mu) ** 2, axis=1, keepdims=True)            # biased var
    y = (y - mu) * jax.lax.rsqrt(var + LN_EPS) * params["gamma"][:, 0] \
        + params["beta"][:, 0]
    y = jnp.maximum(y, 0.0)                                         # ReLU
    add = y @ params["w2"].T + params["b2"][:, 0]                   # (B,C)
    add = add[:, :, None].astype(x.dtype)                           # (B,C,1)

    # ---- kernel 2: HW-tiled fusion on the UNPADDED layout (no crop after) --
    out2d = pl.pallas_call(
        _fusion_kernel,
        out_shape=jax.ShapeDtypeStruct((B, C, HW), x.dtype),
        grid_spec=pltpu.PrefetchScalarGridSpec(
            num_scalar_prefetch=0,
            grid=(B, n_t),
            in_specs=[
                pl.BlockSpec((1, C, t_hw), lambda b, t: (b, 0, t)),   # x
                pl.BlockSpec((1, C, 1), lambda b, t: (b, 0, 0)),      # add term
            ],
            out_specs=pl.BlockSpec((1, C, t_hw), lambda b, t: (b, 0, t)),
        ),
        compiler_params=pltpu.CompilerParams(
            dimension_semantics=("parallel", "parallel"),
            vmem_limit_bytes=_vmem_limit(4 * x_blk + small)),
    )(x2d, add)

    return out2d.reshape(B, C, H, W)                # free reshape, no copy


def context_block_reference(x, params):
    """Pure-JAX reference of the PyTorch forward (channel_add fusion)."""
    B, C, H, W = x.shape
    HW = H * W
    xf = x.reshape(B, C, HW)
    logits = jnp.einsum("oc,bcs->bos", params["wm"], xf) + params["bm"][None]
    attn = jax.nn.softmax(logits, axis=2)
    context = jnp.einsum("bcs,bos->bc", xf, attn)[:, :, None]       # (B, C, 1)
    y = jnp.einsum("pc,bcl->bpl", params["w1"], context) + params["b1"][None]
    mu = jnp.mean(y, axis=1, keepdims=True)
    var = jnp.mean((y - mu) ** 2, axis=1, keepdims=True)
    y = (y - mu) / jnp.sqrt(var + LN_EPS) * params["gamma"][None] + params["beta"][None]
    y = jnp.maximum(y, 0.0)
    add = jnp.einsum("cp,bpl->bcl", params["w2"], y) + params["b2"][None]
    return x + add[:, :, :, None]


def make_params(key, in_ch, r=8, apply_last_zero_init=False):
    P = int(in_ch * r)
    ks = jax.random.split(key, 6)
    params = {
        "wm": 0.1 * jax.random.normal(ks[0], (1, in_ch), jnp.float32),
        "bm": 0.1 * jax.random.normal(ks[1], (1, 1), jnp.float32),
        "w1": 0.1 * jax.random.normal(ks[2], (P, in_ch), jnp.float32),
        "b1": 0.1 * jax.random.normal(ks[3], (P, 1), jnp.float32),
        "gamma": jnp.ones((P, 1), jnp.float32),
        "beta": jnp.zeros((P, 1), jnp.float32),
        "w2": 0.1 * jax.random.normal(ks[4], (in_ch, P), jnp.float32),
        "b2": 0.1 * jax.random.normal(ks[5], (in_ch, 1), jnp.float32),
    }
    if apply_last_zero_init:  # matches reset_parameters() of the PyTorch module
        params["w2"] = jnp.zeros_like(params["w2"])
        params["b2"] = jnp.zeros_like(params["b2"])
    return params


if __name__ == "__main__":
    key = jax.random.PRNGKey(0)

    # (shape, ratio, target_bytes): first is the headline small shape; the
    # others exercise multi-tile, ragged-tail masking, the 2-group split and
    # the channel-aligned no-copy path with tiny tile targets.
    cases = [
        ((2, 4, 16, 16), 8, 4 << 20),
        ((1, 4, 10, 13), 4, 2048),
        ((3, 8, 16, 32), 2, 8192),
    ]
    for shape, r, target in cases:
        B, C, H, W = shape
        key, kx, kp = jax.random.split(key, 3)
        x = jax.random.normal(kx, shape, jnp.float32)
        params = make_params(kp, C, r=r,
                             apply_last_zero_init=APPLY_LAST_ZERO_INIT)

        out = jax.block_until_ready(
            context_block_forward(x, params, target_bytes=target))
        ref = context_block_reference(x, params)

        assert out.shape == shape
        err = float(jnp.max(jnp.abs(out - ref)))
        assert jnp.allclose(out, ref, atol=1e-4, rtol=1e-4), \
            f"shape {shape}: max abs err {err}"

    print("KERNEL_OK")
</pallas_src>

<mosaic_0001>
module attributes {stable_mosaic.version = 11 : i64} {
  func.func @_fusion_kernel(%arg0: i32, %arg1: i32, %arg2: memref<1x4x256xf32, #tpu.memory_space<vmem>>, %arg3: memref<1x4x1xf32, #tpu.memory_space<vmem>>, %arg4: memref<1x4x256xf32, #tpu.memory_space<vmem>>) attributes {dimension_semantics = [#tpu.dimension_semantics<parallel>, #tpu.dimension_semantics<parallel>], iteration_bounds = array<i64: 2, 1>, scalar_prefetch = 0 : i64, scratch_operands = 0 : i64, tpu.core_type = #tpu.core_type<tc>, window_params = [{transform_indices = @transform_0, window_bounds = array<i64: 1, 4, 256>}, {transform_indices = @transform_1, window_bounds = array<i64: 1, 4, 1>}, {transform_indices = @transform_2, window_bounds = array<i64: 1, 4, 256>}]} {
    %c0 = arith.constant 0 : index
    %c0_0 = arith.constant 0 : index
    %c0_1 = arith.constant 0 : index
    %0 = vector.load %arg2[%c0, %c0_0, %c0_1] : memref<1x4x256xf32, #tpu.memory_space<vmem>>, vector<1x4x256xf32>
    %1 = vector.shape_cast %0 : vector<1x4x256xf32> to vector<4x256xf32>
    %c0_2 = arith.constant 0 : index
    %c0_3 = arith.constant 0 : index
    %c0_4 = arith.constant 0 : index
    %2 = vector.load %arg3[%c0_2, %c0_3, %c0_4] : memref<1x4x1xf32, #tpu.memory_space<vmem>>, vector<1x4x1xf32>
    %3 = vector.shape_cast %2 : vector<1x4x1xf32> to vector<4x1xf32>
    %4 = vector.broadcast %3 : vector<4x1xf32> to vector<4x256xf32>
    %5 = arith.addf %1, %4 : vector<4x256xf32>
    %c0_5 = arith.constant 0 : index
    %c0_6 = arith.constant 0 : index
    %c0_7 = arith.constant 0 : index
    %6 = vector.load %arg4[%c0_5, %c0_6, %c0_7] : memref<1x4x256xf32, #tpu.memory_space<vmem>>, vector<1x4x256xf32>
    %7 = vector.shape_cast %6 : vector<1x4x256xf32> to vector<4x256xf32>
    %8 = vector.shape_cast %5 : vector<4x256xf32> to vector<1x4x256xf32>
    tpu.vector_store %arg4[%c0_5, %c0_6, %c0_7], %8 {strides = array<i32>} : memref<1x4x256xf32, #tpu.memory_space<vmem>>, vector<1x4x256xf32>,
    return
  }
  func.func @transform_0(%arg0: i32, %arg1: i32) -> (i32, i32, i32) {
    %c0_i32 = arith.constant 0 : i32
    %c0_i32_0 = arith.constant 0 : i32
    return %arg0, %c0_i32, %arg1 : i32, i32, i32
  }
  func.func @transform_1(%arg0: i32, %arg1: i32) -> (i32, i32, i32) {
    %c0_i32 = arith.constant 0 : i32
    %c0_i32_0 = arith.constant 0 : i32
    %c0_i32_1 = arith.constant 0 : i32
    return %arg0, %c0_i32, %c0_i32_0 : i32, i32, i32
  }
  func.func @transform_2(%arg0: i32, %arg1: i32) -> (i32, i32, i32) {
    %c0_i32 = arith.constant 0 : i32
    %c0_i32_0 = arith.constant 0 : i32
    return %arg0, %c0_i32, %arg1 : i32, i32, i32
  }
}

module attributes {stable_mosaic.version = 11 : i64} {
  func.func @_pool_kernel(%arg0: i32, %arg1: i32, %arg2: i32, %arg3: memref<1x8x256xf32, #tpu.memory_space<vmem>>, %arg4: memref<8x1xf32, #tpu.memory_space<vmem>>, %arg5: memref<1x1xf32, #tpu.memory_space<vmem>>, %arg6: memref<1x1x8x1xf32, #tpu.memory_space<vmem>>, %arg7: memref<1x1x1x1xf32, #tpu.memory_space<vmem>>, %arg8: memref<1x1x1x1xf32, #tpu.memory_space<vmem>>, %arg9: memref<1x1xf32, #tpu.memory_space<vmem>>, %arg10: memref<1x1xf32, #tpu.memory_space<vmem>>, %arg11: memref<8x1xf32, #tpu.memory_space<vmem>>) attributes {dimension_semantics = [#tpu.dimension_semantics<parallel>, #tpu.dimension_semantics<parallel>, #tpu.dimension_semantics<arbitrary>], iteration_bounds = array<i64: 2, 1, 1>, scalar_prefetch = 0 : i64, scratch_operands = 3 : i64, tpu.core_type = #tpu.core_type<tc>, window_params = [{transform_indices = @transform_0, window_bounds = array<i64: 1, 8, 256>}, {pipeline_mode = #tpu.pipeline_mode<synchronous>, transform_indices = @transform_1, window_bounds = array<i64: 8, 1>}, {pipeline_mode = #tpu.pipeline_mode<synchronous>, transform_indices = @transform_2, window_bounds = array<i64: 1, 1>}, {transform_indices = @transform_3, window_bounds = array<i64: 1, 1, 8, 1>}, {transform_indices = @transform_4, window_bounds = array<i64: 1, 1, 1, 1>}, {transform_indices = @transform_5, window_bounds = array<i64: 1, 1, 1, 1>}]} {
    %c0_i32 = arith.constant 0 : i32
    %0 = arith.cmpi eq, %arg2, %c0_i32 : i32
    %1 = arith.extui %0 : i1 to i32
    %c0_i32_0 = arith.constant 0 : i32
    %2 = arith.cmpi ne, %1, %c0_i32_0 : i32
    scf.if %2 {
      %cst_27 = arith.constant -1.000000e+30 : f32
      %43 = vector.broadcast %cst_27 : f32 to vector<1x1xf32>
      %c0_28 = arith.constant 0 : index
      %c0_29 = arith.constant 0 : index
      %44 = vector.load %arg9[%c0_28, %c0_29] : memref<1x1xf32, #tpu.memory_space<vmem>>, vector<1x1xf32>
      tpu.vector_store %arg9[%c0_28, %c0_29], %43 {strides = array<i32>} : memref<1x1xf32, #tpu.memory_space<vmem>>, vector<1x1xf32>,
      %cst_30 = arith.constant 0.000000e+00 : f32
      %45 = vector.broadcast %cst_30 : f32 to vector<1x1xf32>
      %c0_31 = arith.constant 0 : index
      %c0_32 = arith.constant 0 : index
      %46 = vector.load %arg10[%c0_31, %c0_32] : memref<1x1xf32, #tpu.memory_space<vmem>>, vector<1x1xf32>
      tpu.vector_store %arg10[%c0_31, %c0_32], %45 {strides = array<i32>} : memref<1x1xf32, #tpu.memory_space<vmem>>, vector<1x1xf32>,
      %cst_33 = arith.constant 0.000000e+00 : f32
      %47 = vector.broadcast %cst_33 : f32 to vector<8x1xf32>
      %c0_34 = arith.constant 0 : index
      %c0_35 = arith.constant 0 : index
      %48 = vector.load %arg11[%c0_34, %c0_35] : memref<8x1xf32, #tpu.memory_space<vmem>>, vector<8x1xf32>
      tpu.vector_store %arg11[%c0_34, %c0_35], %47 {strides = array<i32>} : memref<8x1xf32, #tpu.memory_space<vmem>>, vector<8x1xf32>,
    } else {
    }
    %c0 = arith.constant 0 : index
    %c0_1 = arith.constant 0 : index
    %c0_2 = arith.constant 0 : index
    %3 = vector.load %arg3[%c0, %c0_1, %c0_2] : memref<1x8x256xf32, #tpu.memory_space<vmem>>, vector<1x8x256xf32>
    %4 = vector.shape_cast %3 : vector<1x8x256xf32> to vector<8x256xf32>
    %c0_3 = arith.constant 0 : index
    %c0_4 = arith.constant 0 : index
    %5 = vector.load %arg4[%c0_3, %c0_4] : memref<8x1xf32, #tpu.memory_space<vmem>>, vector<8x1xf32>
    %6 = vector.broadcast %5 : vector<8x1xf32> to vector<8x256xf32>
    %7 = arith.mulf %4, %6 : vector<8x256xf32>
    %cst = arith.constant dense<0.000000e+00> : vector<256xf32>
    %8 = vector.multi_reduction <add>, %7, %cst [0] : vector<8x256xf32> to vector<256xf32>
    %9 = vector.shape_cast %8 : vector<256xf32> to vector<1x256xf32>
    %c0_5 = arith.constant 0 : index
    %c0_6 = arith.constant 0 : index
    %10 = vector.load %arg5[%c0_5, %c0_6] : memref<1x1xf32, #tpu.memory_space<vmem>>, vector<1x1xf32>
    %11 = vector.broadcast %10 : vector<1x1xf32> to vector<1x256xf32>
    %12 = arith.addf %9, %11 : vector<1x256xf32>
    %c0_7 = arith.constant 0 : index
    %c0_8 = arith.constant 0 : index
    %13 = vector.load %arg9[%c0_7, %c0_8] : memref<1x1xf32, #tpu.memory_space<vmem>>, vector<1x1xf32>
    %cst_9 = arith.constant dense<0xFF800000> : vector<1xf32>
    %14 = vector.multi_reduction <maximumf>, %12, %cst_9 [1] : vector<1x256xf32> to vector<1xf32>
    %15 = vector.shape_cast %14 : vector<1xf32> to vector<1x1xf32>
    %16 = arith.maximumf %13, %15 : vector<1x1xf32>
    %17 = arith.subf %13, %16 : vector<1x1xf32>
    %18 = math.exp %17 : vector<1x1xf32>
    %19 = vector.broadcast %16 : vector<1x1xf32> to vector<1x256xf32>
    %20 = arith.subf %12, %19 : vector<1x256xf32>
    %21 = math.exp %20 : vector<1x256xf32>
    %c0_10 = arith.constant 0 : index
    %c0_11 = arith.constant 0 : index
    %22 = vector.load %arg10[%c0_10, %c0_11] : memref<1x1xf32, #tpu.memory_space<vmem>>, vector<1x1xf32>
    %23 = arith.mulf %18, %22 : vector<1x1xf32>
    %cst_12 = arith.constant dense<0.000000e+00> : vector<1xf32>
    %24 = vector.multi_reduction <add>, %21, %cst_12 [1] : vector<1x256xf32> to vector<1xf32>
    %25 = vector.shape_cast %24 : vector<1xf32> to vector<1x1xf32>
    %26 = arith.addf %23, %25 : vector<1x1xf32>
    %c0_13 = arith.constant 0 : index
    %c0_14 = arith.constant 0 : index
    %27 = vector.load %arg10[%c0_13, %c0_14] : memref<1x1xf32, #tpu.memory_space<vmem>>, vector<1x1xf32>
    tpu.vector_store %arg10[%c0_13, %c0_14], %26 {strides = array<i32>} : memref<1x1xf32, #tpu.memory_space<vmem>>, vector<1x1xf32>,
    %c0_15 = arith.constant 0 : index
    %c0_16 = arith.constant 0 : index
    %c0_17 = arith.constant 0 : index
    %28 = vector.load %arg3[%c0_15, %c0_16, %c0_17] : memref<1x8x256xf32, #tpu.memory_space<vmem>>, vector<1x8x256xf32>
    %29 = vector.shape_cast %28 : vector<1x8x256xf32> to vector<8x256xf32>
    %30 = vector.broadcast %21 : vector<1x256xf32> to vector<8x256xf32>
    %31 = arith.mulf %29, %30 : vector<8x256xf32>
    %c0_18 = arith.constant 0 : index
    %c0_19 = arith.constant 0 : index
    %32 = vector.load %arg11[%c0_18, %c0_19] : memref<8x1xf32, #tpu.memory_space<vmem>>, vector<8x1xf32>
    %33 = vector.broadcast %18 : vector<1x1xf32> to vector<8x1xf32>
    %34 = arith.mulf %33, %32 : vector<8x1xf32>
    %cst_20 = arith.constant dense<0.000000e+00> : vector<8xf32>
    %35 = vector.multi_reduction <add>, %31, %cst_20 [1] : vector<8x256xf32> to vector<8xf32>
    %36 = vector.shape_cast %35 : vector<8xf32> to vector<8x1xf32>
    %37 = arith.addf %34, %36 : vector<8x1xf32>
    %c0_21 = arith.constant 0 : index
    %c0_22 = arith.constant 0 : index
    %38 = vector.load %arg11[%c0_21, %c0_22] : memref<8x1xf32, #tpu.memory_space<vmem>>, vector<8x1xf32>
    tpu.vector_store %arg11[%c0_21, %c0_22], %37 {strides = array<i32>} : memref<8x1xf32, #tpu.memory_space<vmem>>, vector<8x1xf32>,
    %c0_23 = arith.constant 0 : index
    %c0_24 = arith.constant 0 : index
    %39 = vector.load %arg9[%c0_23, %c0_24] : memref<1x1xf32, #tpu.memory_space<vmem>>, vector<1x1xf32>
    tpu.vector_store %arg9[%c0_23, %c0_24], %16 {strides = array<i32>} : memref<1x1xf32, #tpu.memory_space<vmem>>, vector<1x1xf32>,
    %c0_i32_25 = arith.constant 0 : i32
    %40 = arith.cmpi eq, %arg2, %c0_i32_25 : i32
    %41 = arith.extui %40 : i1 to i32
    %c0_i32_26 = arith.constant 0 : i32
    %42 = arith.cmpi ne, %41, %c0_i32_26 : i32
    scf.if %42 {
      %c0_27 = arith.constant 0 : index
      %c0_28 = arith.constant 0 : index
      %43 = vector.load %arg11[%c0_27, %c0_28] : memref<8x1xf32, #tpu.memory_space<vmem>>, vector<8x1xf32>
      %c0_29 = arith.constant 0 : index
      %c0_30 = arith.constant 0 : index
      %c0_31 = arith.constant 0 : index
      %c0_32 = arith.constant 0 : index
      %44 = vector.load %arg6[%c0_29, %c0_30, %c0_31, %c0_32] : memref<1x1x8x1xf32, #tpu.memory_space<vmem>>, vector<1x1x8x1xf32>
      %45 = vector.shape_cast %44 : vector<1x1x8x1xf32> to vector<8x1xf32>
      %46 = vector.shape_cast %43 : vector<8x1xf32> to vector<1x1x8x1xf32>
      tpu.vector_store %arg6[%c0_29, %c0_30, %c0_31, %c0_32], %46 {strides = array<i32>} : memref<1x1x8x1xf32, #tpu.memory_space<vmem>>, vector<1x1x8x1xf32>,
      %c0_33 = arith.constant 0 : index
      %c0_34 = arith.constant 0 : index
      %47 = vector.load %arg10[%c0_33, %c0_34] : memref<1x1xf32, #tpu.memory_space<vmem>>, vector<1x1xf32>
      %c0_35 = arith.constant 0 : index
      %c0_36 = arith.constant 0 : index
      %c0_37 = arith.constant 0 : index
      %c0_38 = arith.constant 0 : index
      %48 = vector.load %arg7[%c0_35, %c0_36, %c0_37, %c0_38] : memref<1x1x1x1xf32, #tpu.memory_space<vmem>>, vector<1x1x1x1xf32>
      %49 = vector.shape_cast %48 : vector<1x1x1x1xf32> to vector<1x1xf32>
      %50 = vector.shape_cast %47 : vector<1x1xf32> to vector<1x1x1x1xf32>
      tpu.vector_store %arg7[%c0_35, %c0_36, %c0_37, %c0_38], %50 {strides = array<i32>} : memref<1x1x1x1xf32, #tpu.memory_space<vmem>>, vector<1x1x1x1xf32>,
      %c0_39 = arith.constant 0 : index
      %c0_40 = arith.constant 0 : index
      %51 = vector.load %arg9[%c0_39, %c0_40] : memref<1x1xf32, #tpu.memory_space<vmem>>, vector<1x1xf32>
      %c0_41 = arith.constant 0 : index
      %c0_42 = arith.constant 0 : index
      %c0_43 = arith.constant 0 : index
      %c0_44 = arith.constant 0 : index
      %52 = vector.load %arg8[%c0_41, %c0_42, %c0_43, %c0_44] : memref<1x1x1x1xf32, #tpu.memory_space<vmem>>, vector<1x1x1x1xf32>
      %53 = vector.shape_cast %52 : vector<1x1x1x1xf32> to vector<1x1xf32>
      %54 = vector.shape_cast %51 : vector<1x1xf32> to vector<1x1x1x1xf32>
      tpu.vector_store %arg8[%c0_41, %c0_42, %c0_43, %c0_44], %54 {strides = array<i32>} : memref<1x1x1x1xf32, #tpu.memory_space<vmem>>, vector<1x1x1x1xf32>,
    } else {
    }
    return
  }
  func.func @transform_0(%arg0: i32, %arg1: i32, %arg2: i32) -> (i32, i32, i32) {
    %c1_i32 = arith.constant 1 : i32
    %0 = arith.muli %arg1, %c1_i32 : i32
    %1 = arith.addi %0, %arg2 : i32
    %c0_i32 = arith.constant 0 : i32
    %c0_i32_0 = arith.constant 0 : i32
    return %arg0, %c0_i32, %1 : i32, i32, i32
  }
  func.func @transform_1(%arg0: i32, %arg1: i32, %arg2: i32) -> (i32, i32) {
    %c0_i32 = arith.constant 0 : i32
    %c0_i32_0 = arith.constant 0 : i32
    %c0_i32_1 = arith.constant 0 : i32
    return %c0_i32, %c0_i32_0 : i32, i32
  }
  func.func @transform_2(%arg0: i32, %arg1: i32, %arg2: i32) -> (i32, i32) {
    %c0_i32 = arith.constant 0 : i32
    %c0_i32_0 = arith.constant 0 : i32
    %c0_i32_1 = arith.constant 0 : i32
    return %c0_i32, %c0_i32_0 : i32, i32
  }
  func.func @transform_3(%arg0: i32, %arg1: i32, %arg2: i32) -> (i32, i32, i32, i32) {
    %c0_i32 = arith.constant 0 : i32
    %c0_i32_0 = arith.constant 0 : i32
    %c0_i32_1 = arith.constant 0 : i32
    return %arg0, %arg1, %c0_i32, %c0_i32_0 : i32, i32, i32, i32
  }
  func.func @transform_4(%arg0: i32, %arg1: i32, %arg2: i32) -> (i32, i32, i32, i32) {
    %c0_i32 = arith.constant 0 : i32
    %c0_i32_0 = arith.constant 0 : i32
    %c0_i32_1 = arith.constant 0 : i32
    return %arg0, %arg1, %c0_i32, %c0_i32_0 : i32, i32, i32, i32
  }
  func.func @transform_5(%arg0: i32, %arg1: i32, %arg2: i32) -> (i32, i32, i32, i32) {
    %c0_i32 = arith.constant 0 : i32
    %c0_i32_0 = arith.constant 0 : i32
    %c0_i32_1 = arith.constant 0 : i32
    return %arg0, %arg1, %c0_i32, %c0_i32_0 : i32, i32, i32, i32
  }
}

</mosaic_0001>

<bundles_post_ra>
// kernel: context_block_forward.2
= control target key start
LH: loop header
LB: loop body
LE: loop exit
PB: predicated region body
PF: predicated region fallthrough
CT: control target
= control target key end

     0   :  { %s666_s20 = smov 0   ;;  %s668_s21 = smov 0   ;;  %s723_s0 = inlined_call_operand.vmem [shape: f32[2,8,256], index: 0, kind: input, shape index: {}]   ;;  %s724_s1 = inlined_call_operand.vmem [shape: f32[8,1], index: 1, kind: input, shape index: {}]   ;;  %s725_s2 = inlined_call_operand.<no memory space> [shape: f32[1,1], index: 2, kind: input, shape index: {}]   ;;  %s726_s3 = inlined_call_operand.vmem [shape: f32[2,1,8,1], index: 3, kind: output, shape index: {0}]   ;;  %s727_s4 = inlined_call_operand.vmem [shape: f32[2,1,1,1], index: 4, kind: output, shape index: {1}]   ;;  %s728_s5 = inlined_call_operand.vmem [shape: f32[2,1,1,1], index: 5, kind: output, shape index: {2}]  }
   0x1   :  { %v11_v0 = vstv %s725_s2  ;;  %s670_s22 = smov 0  }
   0x2   :  { %12 = vst [vmem:[#allocation5] sm:$0x1] %v11_v0 }
   0x3 LB: > { %s37_s2 = sadd.s32 1, %s624_s21  ;;  %p564_p0 = scmp.ge.s32.totalorder %s628_s22, 1  ;;  %s628_s22 = sphi %s670_s22, %s18_s22   ;;  %s624_s21 = sphi %s668_s21, %s730_s21   ;;  %s620_s20 = sphi %s666_s20, %s729_s20  }
   0x4   : > { %p39_p1 = scmp.ge.s32.totalorder %s37_s2, 2  ;;  %p230_p2 = scmp.lt.s32.totalorder %s628_s22, 3 }
   0x6   : > { %s732_s2 = smov (%p39_p1, %s37_s2), 0  ;;  %p231_p3 = pnand %p564_p0, %p230_p2 }
   0x7   : > { %p279_p4 = scmp.lt.s32.totalorder (!%p231_p3), %s620_s20, 1 }
   0x8   : > { %234 = sbr.rel (%p231_p3) target bundleno = 595 (0x253), region = 32 }
   0xd   : > { %v319_v1 = vld [vmem:[%s724_s1] sm:$0xff]  ;;  %v630_v2 = vmov 0   ;;  %v339_v3 = vld [vmem:[#allocation5] sm:$0x1]  ;;  %vm312_vm0 = vcmask 0   ;;  %s734_s20 = smov (!%p279_p4, %s620_s20), 1  ;;  %v345_v10 = vlaneseq }
   0xe   : > { %598 = vset.pattern.permute.xlu0 %v630_v2  ;;  %599 = vset.pattern.permute.xlu1 %v630_v2  ;;  %v631_v4 = vmov -1e+30   ;;  %s570_s25 = sshll.u32 %s734_s20, 4  ;;  %v632_v30 = vmov 0.0   ;;  %vm315_vm1 = vcmask 7168   ;;  %s307_s6 = scalar_lea.vmem %s728_s5, %s734_s20 }
   0xf   : > { %322 = vperm.xlu0 %598, %v319_v1   ;;  %313 = vst.msk [vmem:[#allocation2] sm:$0x1] %vm312_vm0, %v631_v4  ;;  %s286_s28 = scalar_lea.vmem %s723_s0, %s570_s25  ;;  %v346_v15 = vshrl.u32 %v345_v10, 7  ;;  %314 = vst.msk [vmem:[#allocation3] sm:$0x1] %vm312_vm0, %v632_v30  ;;  %s567_s7 = sshll.u32 %s734_s20, 3 }
  0x10   : > { %v317_v5 = vld [vmem:[%s286_s28] sm:$0xff]  ;;  %v318_v6 = vld [vmem:[%s286_s28 + $0x8] sm:$0xff]  ;;  %316 = vst.msk [vmem:[#allocation4] sm:$0xff] %vm315_vm1, %v632_v30  ;;  %s301_s10 = scalar_lea.vmem %s727_s4, %s734_s20  ;;  %s295_s13 = scalar_lea.vmem %s726_s3, %s567_s7 }
  0x11   : > { %v347_v20 = vsub.s32 0, %v346_v15 }
  0x13   : > { %342 = vperm.xlu0 %598, %v339_v3  }
  0x16   : > { %v351_v31 = vld [vmem:[#allocation2] sm:$0x1]  ;;  %v374_v50 = vld [vmem:[#allocation3] sm:$0x1] }
  0x17   : > { %v386_v52 = vld [vmem:[#allocation4] sm:$0xff] }
  0x8a   : > { %v323_v7 = vpop.permute.xlu0 %322 }
  0x8b   : > { %v325_v8 = vmul.f32 %v323_v7, %v317_v5  ;;  %v326_v9 = vmul.f32 %v323_v7, %v318_v6 }
  0x8d   : > { %v327_v11 = vrot.slane %v325_v8, 4  ;;  %v333_v12 = vrot.slane %v326_v9, 4 }
  0x8e   : > { %v343_v21 = vpop.permute.xlu0 %342 }
  0x8f   : > { %v328_v13 = vadd.f32 %v327_v11, %v325_v8  ;;  %v334_v14 = vadd.f32 %v333_v12, %v326_v9  ;;  %v348_v24 = vrot.slane %v343_v21, %v347_v20 }
  0x91   : > { %v329_v16 = vrot.slane %v328_v13, 2  ;;  %v335_v17 = vrot.slane %v334_v14, 2 }
  0x93   : > { %v330_v18 = vadd.f32 %v329_v16, %v328_v13  ;;  %v336_v19 = vadd.f32 %v335_v17, %v334_v14 }
  0x95   : > { %v331_v22 = vrot.slane %v330_v18, 1  ;;  %v337_v23 = vrot.slane %v336_v19, 1 }
  0x97   : > { %v332_v25 = vadd.f32 %v331_v22, %v330_v18  ;;  %v338_v26 = vadd.f32 %v337_v23, %v336_v19 }
  0x99   : > { %v349_v27 = vadd.f32 %v348_v24, %v332_v25  ;;  %v350_v28 = vadd.f32 %v348_v24, %v338_v26 }
  0x9b   : > { %v352_v29 = vmax.f32 %v349_v27, %v350_v28 }
  0x9d   : > { %353 = vmax.xlane.f32.xlu1 %v352_v29 }
 0x126   : > { %v354_v32 = vpop.xlane.xlu1 %353 }
 0x127   : > { %v355_v33 = vmax.f32 %v351_v31, %v354_v32 }
 0x129   : > { %v356_v34 = vsub.f32 %v351_v31, %v355_v33  ;;  %400 = vst.msk [vmem:[#allocation2] sm:$0x1] %vm312_vm0, %v355_v33  ;;  %361 = vperm.xlu1 %599, %v355_v33  }
 0x12b   : > { %v357_v48 = vmul.f32 1.442695, %v356_v34 }
 0x130   : > { %v408_v35 = vld [vmem:[#allocation2] sm:$0x1] }
 0x131   : > { %409 = vst.msk [vmem:[%s307_s6] sm:$0x1] %vm312_vm0, %v408_v35 }
 0x1a4   : > { %v362_v36 = vpop.permute.xlu1 %361 }
 0x1a5   : > { %v367_v37 = vrot.slane %v362_v36, %v347_v20 }
 0x1a7   : > { %v368_v38 = vsub.f32 %v349_v27, %v367_v37  ;;  %v369_v39 = vsub.f32 %v350_v28, %v367_v37 }
 0x1a9   : > { %v370_v40 = vmul.f32 1.442695, %v368_v38  ;;  %v372_v41 = vmul.f32 1.442695, %v369_v39 }
 0x1ab   : > { %600 = vpow2.f32 %v370_v40 }
 0x1ac   : > { %602 = vpow2.f32 %v372_v41 }
 0x1ad   : > { %604 = vpow2.f32 %v357_v48 }
 0x1b8   : > { %v601_v42 = vpop.eup %600 }
 0x1b9   : > { %v603_v43 = vpop.eup %602  ;;  %v384_v44 = vmul.f32 %v601_v42, %v317_v5 }
 0x1ba   : > { %v376_v45 = vadd.f32 %v603_v43, %v601_v42  ;;  %v385_v46 = vmul.f32 %v603_v43, %v318_v6  ;;  %v605_v49 = vpop.eup %604 }
 0x1bb   : > { %v391_v51 = vrot.slane %v605_v49, %v347_v20  ;;  %v375_v53 = vmul.f32 %v605_v49, %v374_v50 }
 0x1bc   : > { %377 = vadd.xlane.f32.xlu0 %v376_v45  ;;  %v394_v47 = vadd.f32 %v385_v46, %v384_v44 }
 0x1bd   : > { %v393_v56 = vmul.f32 %v391_v51, %v386_v52 }
 0x1be   : > { %395 = vadd.xlane.f32.xlu1 %v394_v47 }
 0x245   : > { %v378_v54 = vpop.xlane.xlu0 %377 }
 0x246   : > { %v379_v55 = vadd.f32 %v378_v54, %v375_v53 }
 0x247   : > { %v396_v57 = vpop.xlane.xlu1 %395 }
 0x248   : > { %381 = vst.msk [vmem:[#allocation3] sm:$0x1] %vm312_vm0, %v379_v55  ;;  %v397_v58 = vadd.f32 %v396_v57, %v393_v56 }
 0x24a   : > { %399 = vst.msk [vmem:[#allocation4] sm:$0xff] %vm315_vm1, %v397_v58 }
 0x24f   : > { %v406_v59 = vld [vmem:[#allocation3] sm:$0x1] }
 0x250   : > { %407 = vst.msk [vmem:[%s301_s10] sm:$0x1] %vm312_vm0, %v406_v59 }
 0x251   : > { %v404_v60 = vld [vmem:[#allocation4] sm:$0xff] }
 0x252   : > { %405 = vst.msk [vmem:[%s295_s13] sm:$0xff] %vm315_vm1, %v404_v60 }
 0x253 PF: > { %s18_s22 = sadd.s32 1, %s628_s22   ;;  %s729_s20 = smov %s624_s21 }
 0x254   : > { %p15_p5 = scmp.ge.s32.totalorder %s18_s22, 4   ;;  %s730_s21 = smov %s732_s2 }
 0x256   :  { %17 = sbr.rel (!%p15_p5) target bundleno = 3 (0x3), region = 94 }

// kernel: context_block_forward.3
= control target key start
LH: loop header
LB: loop body
LE: loop exit
PB: predicated region body
PF: predicated region fallthrough
CT: control target
= control target key end

     0   :  { %s397_s9 = smov 0   ;;  %s399_s10 = smov 0   ;;  %s430_s0 = inlined_call_operand.vmem [shape: f32[2,4,256], index: 0, kind: input, shape index: {}]   ;;  %s431_s1 = inlined_call_operand.vmem [shape: f32[2,4,1], index: 1, kind: input, shape index: {}]   ;;  %s432_s2 = inlined_call_operand.vmem [shape: f32[2,4,256], index: 2, kind: output, shape index: {}]  }
   0x1   :  { %s401_s11 = smov 0  }
   0x2 LB: > { %s24_s12 = sadd.s32 1, %s374_s10  ;;  %p319_p0 = scmp.ge.s32.totalorder %s378_s11, 1  ;;  %s378_s11 = sphi %s401_s11, %s12_s11   ;;  %s374_s10 = sphi %s399_s10, %s434_s10   ;;  %s370_s9 = sphi %s397_s9, %s433_s9  }
   0x3   : > { %p26_p1 = scmp.ge.s32.totalorder %s24_s12, 2  ;;  %p142_p2 = scmp.lt.s32.totalorder %s378_s11, 3 }
   0x5   : > { %s436_s12 = smov (%p26_p1, %s24_s12), 0  ;;  %p143_p3 = pnand %p319_p0, %p142_p2 }
   0x6   : > { %p177_p4 = scmp.lt.s32.totalorder (!%p143_p3), %s370_s9, 1 }
   0x7   : > { %146 = sbr.rel (%p143_p3) target bundleno = 145 (0x91), region = 28 }
   0xc   : > { %v380_v0 = vmov 0   ;;  %s438_s9 = smov (!%p177_p4, %s370_s9), 1  ;;  %v381_v2 = vmov 839922192   ;;  %v209_v4 = vlaneseq }
   0xd   : > { %355 = vset.pattern.permute.xlu0 %v380_v0  ;;  %s322_s13 = sshll.u32 %s438_s9, 2  ;;  %v207_v3 = vunpack.c.l.s4 %v381_v2  ;;  %s327_s17 = sshll.u32 %s438_s9, 3 }
   0xe   : > { %s189_s16 = scalar_lea.vmem %s431_s1, %s322_s13  ;;  %v210_v6 = vshrl.u32 %v209_v4, 7  ;;  %s184_s20 = scalar_lea.vmem %s430_s0, %s327_s17 }
   0xf   : > { %v201_v1 = vld [vmem:[%s189_s16] sm:$0xf]  ;;  %v208_v5 = vunpack.c.0.s8 %v207_v3  ;;  %s198_s23 = scalar_lea.vmem %s432_s2, %s327_s17 }
  0x10   : > { %204 = vperm.xlu0 %355, %v201_v1   ;;  %v200_v9 = vld [vmem:[%s184_s20] sm:$0xff] }
  0x11   : > { %v211_v7 = vsub.s32 %v208_v5, %v210_v6 }
  0x8b   : > { %v205_v8 = vpop.permute.xlu0 %204 }
  0x8c   : > { %v212_v10 = vrot.slane %v205_v8, %v211_v7 }
  0x8e   : > { %v214_v11 = vadd.f32 %v212_v10, %v200_v9 }
  0x90   : > { %215 = vst [vmem:[%s198_s23] sm:$0xff] %v214_v11 }
  0x91 PF: > { %s12_s11 = sadd.s32 1, %s378_s11   ;;  %s433_s9 = smov %s374_s10 }
  0x92   : > { %p9_p5 = scmp.ge.s32.totalorder %s12_s11, 4   ;;  %s434_s10 = smov %s436_s12 }
  0x94   :  { %11 = sbr.rel (!%p9_p5) target bundleno = 2 (0x2), region = 61 }

</bundles_post_ra>
